<compile_context>
chip_gen: v5e
topology: v5e:2x2
jax: 0.10.0
libtpu: 0.0.40
codegen_flags: <defaults>
</compile_context>

<pallas_src>
import jax
import jax.numpy as jnp
from jax import lax
from jax.experimental import pallas as pl
from jax.experimental.pallas import tpu as pltpu


def _round_up(x, m):
    return (x + m - 1) // m * m


def _vmem_capacity_bytes():
    """Per-core VMEM capacity; conservative 64 MiB (v7x) fallback."""
    try:
        info = pltpu.get_tpu_info()
        for attr in ("vmem_capacity_bytes", "vmem_bytes", "vmem_size_bytes"):
            v = getattr(info, attr, None)
            if v is None or callable(v):
                continue
            try:
                v = int(v)
            except Exception:
                continue
            if v > 0:
                return v
    except Exception:
        pass
    return 64 << 20


# -----------------------------------------------------------------------------
# Kernels
# -----------------------------------------------------------------------------
_DN_LAST_LAST = (((1,), (1,)), ((), ()))  # contract last dim of both operands


def _mlp_tiled_kernel(x_ref, w1_ref, w2_ref, wp_ref, o_ref, acc_ref):
    # x_ref  : (TM, D)  activation tile (compute dtype, e.g. bf16)
    # w1_ref : (TH, D)  c_fc.weight   tile, PyTorch (out, in) layout
    # w2_ref : (TH, D)  c_fc2.weight  tile, PyTorch (out, in) layout
    # wp_ref : (D, TH)  c_proj.weight tile, PyTorch (out, in) layout
    # o_ref  : (TM, D)  output tile
    # acc_ref: (TM, D)  fp32 accumulator, resident across the H (reduction) axis
    h = pl.program_id(1)

    @pl.when(h == 0)
    def _():
        acc_ref[...] = jnp.zeros_like(acc_ref)

    x = x_ref[...]
    h1 = lax.dot_general(x, w1_ref[...], _DN_LAST_LAST,
                         preferred_element_type=jnp.float32)
    h2 = lax.dot_general(x, w2_ref[...], _DN_LAST_LAST,
                         preferred_element_type=jnp.float32)
    gated = h1 * (h2 * jax.nn.sigmoid(h2))  # SwiGLU gating in fp32

    acc_ref[...] += lax.dot_general(
        gated.astype(wp_ref.dtype), wp_ref[...], _DN_LAST_LAST,
        preferred_element_type=jnp.float32)

    @pl.when(h == pl.num_programs(1) - 1)
    def _():
        o_ref[...] = acc_ref[...].astype(o_ref.dtype)


def _mlp_resident_kernel(x_ref, w1_ref, w2_ref, wp_ref, o_ref):
    # Weights-resident fast path: weights are full-extent blocks with a
    # constant index map, so they are DMA'd exactly once while rows stream.
    x = x_ref[...]
    h1 = lax.dot_general(x, w1_ref[...], _DN_LAST_LAST,
                         preferred_element_type=jnp.float32)
    h2 = lax.dot_general(x, w2_ref[...], _DN_LAST_LAST,
                         preferred_element_type=jnp.float32)
    gated = h1 * (h2 * jax.nn.sigmoid(h2))
    o_ref[...] = lax.dot_general(
        gated.astype(wp_ref.dtype), wp_ref[...], _DN_LAST_LAST,
        preferred_element_type=jnp.float32).astype(o_ref.dtype)


# -----------------------------------------------------------------------------
# VMEM footprint estimators (include the in-kernel intermediates)
# -----------------------------------------------------------------------------
def _tiled_vmem_need(tm, th, d, itemsize, out_itemsize):
    weights = 2 * 3 * th * d * itemsize                 # double-buffered w1,w2,wp tiles
    acts = 2 * tm * d * (itemsize + out_itemsize)       # double-buffered x + out tiles
    acc = tm * d * 4                                    # fp32 accumulator scratch
    inter = tm * th * (3 * 4 + itemsize)                # h1,h2,gated fp32 + bf16 copy
    return weights + acts + acc + inter


def _resident_vmem_need(tm, h_dim, d, itemsize, out_itemsize):
    weights = 2 * 3 * h_dim * d * itemsize              # conservative: count 2 buffers
    acts = 2 * tm * d * (itemsize + out_itemsize)
    inter = tm * h_dim * (3 * 4 + itemsize)
    return weights + acts + inter


_TM_CANDIDATES = (1024, 896, 768, 640, 512, 448, 384, 320, 256, 192, 128,
                  96, 64, 32, 16, 8)


# -----------------------------------------------------------------------------
# Wrapper
# -----------------------------------------------------------------------------
def mlp_pallas(x, w_fc, w_fc2, w_proj, *, compute_dtype=jnp.bfloat16,
               tm=None, th=None, weights_resident=None, vmem_budget=None):
    """x: (B, T, n_embd). Weights in PyTorch nn.Linear layout (out, in)."""
    B, T, D = x.shape
    H = w_fc.shape[0]
    assert w_fc.shape == (H, D) and w_fc2.shape == (H, D) and w_proj.shape == (D, H)

    out_dtype = x.dtype
    itemsize = jnp.dtype(compute_dtype).itemsize
    out_itemsize = jnp.dtype(out_dtype).itemsize

    M = B * T
    m_pad = _round_up(M, 8)                      # sublane-dense rows
    x2d = x.reshape(M, D).astype(compute_dtype)
    w1 = w_fc.astype(compute_dtype)
    w2 = w_fc2.astype(compute_dtype)
    wp = w_proj.astype(compute_dtype)

    # --- VMEM budget (generation-aware) --------------------------------------
    vmem_cap = _vmem_capacity_bytes()
    if vmem_budget is None:
        vmem_budget = max(vmem_cap - (16 << 20), 24 << 20)   # keep headroom

    # --- candidate tile sizes -------------------------------------------------
    if tm is not None:
        tm_candidates = [max(8, min(_round_up(int(tm), 8), m_pad))]
    else:
        tm_candidates = [c for c in _TM_CANDIDATES if c <= m_pad]
        if not tm_candidates or (m_pad < _TM_CANDIDATES[0]
                                 and m_pad not in tm_candidates):
            tm_candidates.insert(0, m_pad)

    if th is not None:
        th_candidates = [int(th)]
    else:
        lane_cap = min(2048, (H // 128) * 128)
        th_candidates = [c for c in range(lane_cap, 0, -128) if H % c == 0]
        if not th_candidates:
            th_candidates = [H]                  # full-extent fallback

    # --- weights-resident fast path? -----------------------------------------
    resident_tm = None
    for c_tm in tm_candidates:
        if _resident_vmem_need(c_tm, H, D, itemsize, out_itemsize) <= vmem_budget:
            resident_tm = c_tm
            break
    if weights_resident is None:
        weights_resident = (resident_tm is not None
                            and resident_tm >= min(m_pad, 128))
    if weights_resident and resident_tm is None:
        resident_tm = tm_candidates[0]

    # --- tiled-path tile selection (largest TM first, then TH) ---------------
    best = None
    for c_th in th_candidates:
        for c_tm in tm_candidates:
            if _tiled_vmem_need(c_tm, c_th, D, itemsize, out_itemsize) <= vmem_budget:
                cand = (c_tm, c_th)
                if best is None or cand > best:
                    best = cand
                break
    if best is None:
        best = (tm_candidates[-1], th_candidates[-1])
    tiled_tm, tiled_th = best
    # Prefer a TM that divides M (avoids padding == extra HBM pass) as long as
    # it is not much smaller than the best-fitting TM.
    if m_pad % tiled_tm != 0:
        for c in tm_candidates:
            if (c <= tiled_tm and 2 * c >= tiled_tm and m_pad % c == 0 and
                    _tiled_vmem_need(c, tiled_th, D, itemsize, out_itemsize)
                    <= vmem_budget):
                tiled_tm = c
                break

    if weights_resident:
        tm_final = resident_tm
        need = _resident_vmem_need(tm_final, H, D, itemsize, out_itemsize)
    else:
        tm_final = tiled_tm
        th_final = tiled_th
        assert H % th_final == 0, (H, th_final)
        need = _tiled_vmem_need(tm_final, th_final, D, itemsize, out_itemsize)

    # --- pad rows only if TM does not divide them ------------------------------
    m_grid_pad = _round_up(m_pad, tm_final)
    if m_grid_pad != M:
        x2d = jnp.pad(x2d, ((0, m_grid_pad - M), (0, 0)))
    grid_m = m_grid_pad // tm_final

    vmem_limit = int(min(vmem_cap, max(need + (16 << 20), 32 << 20)))

    # --- cost estimate (weights re-read once per row tile in the tiled path) --
    weight_reads = 1 if weights_resident else grid_m
    cost = pl.CostEstimate(
        flops=6 * m_grid_pad * D * H,
        transcendentals=m_grid_pad * H,
        bytes_accessed=(m_grid_pad * D * itemsize
                        + weight_reads * 3 * H * D * itemsize
                        + m_grid_pad * D * out_itemsize))

    if weights_resident:
        out2d = pl.pallas_call(
            _mlp_resident_kernel,
            out_shape=jax.ShapeDtypeStruct((m_grid_pad, D), out_dtype),
            grid_spec=pltpu.PrefetchScalarGridSpec(
                num_scalar_prefetch=0,
                grid=(grid_m,),
                in_specs=[
                    pl.BlockSpec((tm_final, D), lambda i: (i, 0)),   # x
                    pl.BlockSpec((H, D), lambda i: (0, 0)),          # c_fc.weight
                    pl.BlockSpec((H, D), lambda i: (0, 0)),          # c_fc2.weight
                    pl.BlockSpec((D, H), lambda i: (0, 0)),          # c_proj.weight
                ],
                out_specs=pl.BlockSpec((tm_final, D), lambda i: (i, 0)),
            ),
            compiler_params=pltpu.CompilerParams(
                dimension_semantics=("parallel",),
                vmem_limit_bytes=vmem_limit,
            ),
            cost_estimate=cost,
        )(x2d, w1, w2, wp)
    else:
        grid = (grid_m, H // th_final)
        out2d = pl.pallas_call(
            _mlp_tiled_kernel,
            out_shape=jax.ShapeDtypeStruct((m_grid_pad, D), out_dtype),
            grid_spec=pltpu.PrefetchScalarGridSpec(
                num_scalar_prefetch=0,
                grid=grid,
                in_specs=[
                    pl.BlockSpec((tm_final, D), lambda i, h: (i, 0)),   # x
                    pl.BlockSpec((th_final, D), lambda i, h: (h, 0)),   # c_fc.weight
                    pl.BlockSpec((th_final, D), lambda i, h: (h, 0)),   # c_fc2.weight
                    pl.BlockSpec((D, th_final), lambda i, h: (0, h)),   # c_proj.weight
                ],
                out_specs=pl.BlockSpec((tm_final, D), lambda i, h: (i, 0)),
                scratch_shapes=[pltpu.VMEM((tm_final, D), jnp.float32)],
            ),
            compiler_params=pltpu.CompilerParams(
                dimension_semantics=("parallel", "arbitrary"),
                vmem_limit_bytes=vmem_limit,
            ),
            cost_estimate=cost,
        )(x2d, w1, w2, wp)

    return out2d[:M].reshape(B, T, D)


# -----------------------------------------------------------------------------
# Reference / demo
# -----------------------------------------------------------------------------
def _hidden_dim(n_embd, multiple_of, ffn_dim_multiplier=None):
    hidden = 4 * n_embd
    hidden = int(2 * hidden / 3)
    if ffn_dim_multiplier is not None:
        hidden = int(ffn_dim_multiplier * hidden)
    hidden = multiple_of * ((hidden + multiple_of - 1) // multiple_of)
    return hidden


def _ref_matched(x, w_fc, w_fc2, w_proj, compute_dtype):
    """Pure-JAX reference with the same precision policy as the kernel."""
    B, T, D = x.shape
    xc = x.reshape(-1, D).astype(compute_dtype)
    w1 = w_fc.astype(compute_dtype)
    w2 = w_fc2.astype(compute_dtype)
    wp = w_proj.astype(compute_dtype)
    h1 = lax.dot_general(xc, w1, _DN_LAST_LAST, preferred_element_type=jnp.float32)
    h2 = lax.dot_general(xc, w2, _DN_LAST_LAST, preferred_element_type=jnp.float32)
    gated = h1 * (h2 * jax.nn.sigmoid(h2))
    out = lax.dot_general(gated.astype(compute_dtype), wp, _DN_LAST_LAST,
                          preferred_element_type=jnp.float32)
    return out.astype(x.dtype).reshape(B, T, D)


if __name__ == "__main__":
    # Small config consistent with the module's __init__ math.
    B, T = 2, 8
    n_embd = 128
    multiple_of = 128
    ffn_dim_multiplier = None
    hidden = _hidden_dim(n_embd, multiple_of, ffn_dim_multiplier)  # -> 384

    key = jax.random.PRNGKey(0)
    kx, k1, k2, k3 = jax.random.split(key, 4)

    x = jax.random.normal(kx, (B, T, n_embd), dtype=jnp.float32)
    # weights in PyTorch nn.Linear layout: (out_features, in_features)
    scale_in = 1.0 / jnp.sqrt(n_embd)
    scale_h = 1.0 / jnp.sqrt(hidden)
    w_fc = jax.random.normal(k1, (hidden, n_embd), dtype=jnp.float32) * scale_in
    w_fc2 = jax.random.normal(k2, (hidden, n_embd), dtype=jnp.float32) * scale_in
    w_proj = jax.random.normal(k3, (n_embd, hidden), dtype=jnp.float32) * scale_h

    # References.
    ref_bf16 = _ref_matched(x, w_fc, w_fc2, w_proj, jnp.bfloat16)
    h1 = x @ w_fc.T
    h2 = x @ w_fc2.T
    ref_f32 = (h1 * (h2 * jax.nn.sigmoid(h2))) @ w_proj.T

    # 1) Auto path: weights fit VMEM at this size -> weights-resident fast path.
    out_fast = jax.block_until_ready(mlp_pallas(x, w_fc, w_fc2, w_proj))
    assert out_fast.shape == (B, T, n_embd)
    assert jnp.allclose(out_fast, ref_bf16, atol=1e-2, rtol=1e-2), \
        "fast path mismatch vs matched-precision reference"
    assert jnp.allclose(out_fast, ref_f32, atol=5e-2, rtol=5e-2), \
        "fast path mismatch vs fp32 reference"

    # 2) Forced H-tiled reduction path (exercises the fp32 accumulator across
    #    multiple hidden-dim steps and multiple row tiles).
    out_tiled = jax.block_until_ready(
        mlp_pallas(x, w_fc, w_fc2, w_proj, weights_resident=False, tm=8, th=128))
    assert jnp.allclose(out_tiled, ref_bf16, atol=1e-2, rtol=1e-2), \
        "tiled path mismatch vs matched-precision reference"

    # 3) Auto tile selection under a tight VMEM budget (forces the tiled path
    #    through the automatic TM/TH search).
    out_small = jax.block_until_ready(
        mlp_pallas(x, w_fc, w_fc2, w_proj, vmem_budget=512 * 1024))
    assert jnp.allclose(out_small, ref_bf16, atol=1e-2, rtol=1e-2), \
        "auto-tiled path mismatch vs matched-precision reference"

    print("KERNEL_OK")
</pallas_src>

<mosaic_0001>
module attributes {stable_mosaic.version = 11 : i64} {
  func.func @_mlp_resident_kernel(%arg0: i32, %arg1: memref<16x128xbf16, #tpu.memory_space<vmem>>, %arg2: memref<384x128xbf16, #tpu.memory_space<vmem>>, %arg3: memref<384x128xbf16, #tpu.memory_space<vmem>>, %arg4: memref<128x384xbf16, #tpu.memory_space<vmem>>, %arg5: memref<16x128xf32, #tpu.memory_space<vmem>>) attributes {dimension_semantics = [#tpu.dimension_semantics<parallel>], iteration_bounds = array<i64: 1>, scalar_prefetch = 0 : i64, scratch_operands = 0 : i64, tpu.core_type = #tpu.core_type<tc>, window_params = [{transform_indices = @transform_0, window_bounds = array<i64: 16, 128>}, {pipeline_mode = #tpu.pipeline_mode<synchronous>, transform_indices = @transform_1, window_bounds = array<i64: 384, 128>}, {pipeline_mode = #tpu.pipeline_mode<synchronous>, transform_indices = @transform_2, window_bounds = array<i64: 384, 128>}, {pipeline_mode = #tpu.pipeline_mode<synchronous>, transform_indices = @transform_3, window_bounds = array<i64: 128, 384>}, {transform_indices = @transform_4, window_bounds = array<i64: 16, 128>}]} {
    %c0 = arith.constant 0 : index
    %c0_0 = arith.constant 0 : index
    %0 = vector.load %arg1[%c0, %c0_0] : memref<16x128xbf16, #tpu.memory_space<vmem>>, vector<16x128xbf16>
    %c0_1 = arith.constant 0 : index
    %c0_2 = arith.constant 0 : index
    %1 = vector.load %arg2[%c0_1, %c0_2] : memref<384x128xbf16, #tpu.memory_space<vmem>>, vector<384x128xbf16>
    %cst = arith.constant dense<0.000000e+00> : vector<16x384xf32>
    %2 = tpu.matmul %0, %1, %cst {dimension_numbers = #tpu.dot_dimension_numbers<[1], [1], [0], [0], [0, 0, 1, 0], [], []>} : vector<16x128xbf16>, vector<384x128xbf16>, vector<16x384xf32> -> vector<16x384xf32>
    %c0_3 = arith.constant 0 : index
    %c0_4 = arith.constant 0 : index
    %3 = vector.load %arg3[%c0_3, %c0_4] : memref<384x128xbf16, #tpu.memory_space<vmem>>, vector<384x128xbf16>
    %cst_5 = arith.constant dense<0.000000e+00> : vector<16x384xf32>
    %4 = tpu.matmul %0, %3, %cst_5 {dimension_numbers = #tpu.dot_dimension_numbers<[1], [1], [0], [0], [0, 0, 1, 0], [], []>} : vector<16x128xbf16>, vector<384x128xbf16>, vector<16x384xf32> -> vector<16x384xf32>
    %5 = arith.negf %4 : vector<16x384xf32>
    %6 = math.exp %5 : vector<16x384xf32>
    %cst_6 = arith.constant 1.000000e+00 : f32
    %7 = vector.broadcast %cst_6 : f32 to vector<16x384xf32>
    %8 = arith.addf %7, %6 : vector<16x384xf32>
    %9 = arith.divf %7, %8 : vector<16x384xf32>
    %10 = arith.mulf %4, %9 : vector<16x384xf32>
    %11 = arith.mulf %2, %10 : vector<16x384xf32>
    %12 = arith.truncf %11 : vector<16x384xf32> to vector<16x384xbf16>
    %c0_7 = arith.constant 0 : index
    %c0_8 = arith.constant 0 : index
    %13 = vector.load %arg4[%c0_7, %c0_8] : memref<128x384xbf16, #tpu.memory_space<vmem>>, vector<128x384xbf16>
    %cst_9 = arith.constant dense<0.000000e+00> : vector<16x128xf32>
    %14 = tpu.matmul %12, %13, %cst_9 {dimension_numbers = #tpu.dot_dimension_numbers<[1], [1], [0], [0], [0, 0, 1, 0], [], []>} : vector<16x384xbf16>, vector<128x384xbf16>, vector<16x128xf32> -> vector<16x128xf32>
    %c0_10 = arith.constant 0 : index
    %c0_11 = arith.constant 0 : index
    %15 = vector.load %arg5[%c0_10, %c0_11] : memref<16x128xf32, #tpu.memory_space<vmem>>, vector<16x128xf32>
    tpu.vector_store %arg5[%c0_10, %c0_11], %14 {strides = array<i32>} : memref<16x128xf32, #tpu.memory_space<vmem>>, vector<16x128xf32>,
    return
  }
  func.func @transform_0(%arg0: i32) -> (i32, i32) {
    %c0_i32 = arith.constant 0 : i32
    %c0_i32_0 = arith.constant 0 : i32
    return %arg0, %c0_i32 : i32, i32
  }
  func.func @transform_1(%arg0: i32) -> (i32, i32) {
    %c0_i32 = arith.constant 0 : i32
    %c0_i32_0 = arith.constant 0 : i32
    %c0_i32_1 = arith.constant 0 : i32
    return %c0_i32, %c0_i32_0 : i32, i32
  }
  func.func @transform_2(%arg0: i32) -> (i32, i32) {
    %c0_i32 = arith.constant 0 : i32
    %c0_i32_0 = arith.constant 0 : i32
    %c0_i32_1 = arith.constant 0 : i32
    return %c0_i32, %c0_i32_0 : i32, i32
  }
  func.func @transform_3(%arg0: i32) -> (i32, i32) {
    %c0_i32 = arith.constant 0 : i32
    %c0_i32_0 = arith.constant 0 : i32
    %c0_i32_1 = arith.constant 0 : i32
    return %c0_i32, %c0_i32_0 : i32, i32
  }
  func.func @transform_4(%arg0: i32) -> (i32, i32) {
    %c0_i32 = arith.constant 0 : i32
    %c0_i32_0 = arith.constant 0 : i32
    return %arg0, %c0_i32 : i32, i32
  }
}

</mosaic_0001>

<bundles_post_ra>
// kernel: tpu_custom_call.1
= control target key start
LH: loop header
LB: loop body
LE: loop exit
PB: predicated region body
PF: predicated region fallthrough
CT: control target
= control target key end

     0   :  { %9 = vsyncpa [#allocation3], 0  ;;  %s1544_s0 = inlined_call_operand.hbm [shape: bf16[16,128], index: 0, kind: input, shape index: {}]   ;;  %s1545_s1 = inlined_call_operand.hbm [shape: bf16[384,128], index: 1, kind: input, shape index: {}]   ;;  %s1546_s2 = inlined_call_operand.hbm [shape: bf16[384,128], index: 2, kind: input, shape index: {}]   ;;  %s1547_s3 = inlined_call_operand.hbm [shape: bf16[128,384], index: 3, kind: input, shape index: {}]   ;;  %s1548_s4 = inlined_call_operand.hbm [shape: f32[16,128], index: 4, kind: output, shape index: {}]  }
   0x1   :  { %10 = vsyncpa [#allocation6], 0 }
   0x2   :  { %11 = vsyncpa [#allocation9], 0 }
   0x3   :  { %12 = vsyncpa [#allocation4], 0  ;;  %s30_s17 = sshll.u32 %s1545_s1, 4  ;;  %s1445_s18 = smov [#allocation5]   ;;  %s31_s17 = int_to_ptr.hbm [resolvable:$true] %s30_s17 }
   0x4   :  { %s32_s19 = sshll.u32 %s1445_s18, 4  ;;  %s17_s22 = sshll.u32 %s1544_s0, 4  ;;  %s33_s19 = int_to_ptr.vmem [resolvable:$true] %s32_s19  ;;  %s18_s22 = int_to_ptr.hbm [resolvable:$true] %s17_s22 }
   0x5   :  { %s1446_s23 = smov 64   ;;  %s1447_s24 = smov 4  }
   0x6   :  { %38 = dma.hbm_to_vmem [thread:$0]  %s31_s17, 3072, %s33_s19, [#allocation6], %s1446_s23, %s1446_s23, %s1447_s24  }
   0x7   :  { %s1448_s25 = smov [#allocation2]   ;;  %s43_s29 = sshll.u32 %s1546_s2, 4  ;;  %s44_s29 = int_to_ptr.hbm [resolvable:$true] %s43_s29 }
   0x8   :  { %s19_s26 = sshll.u32 %s1448_s25, 4  ;;  %s56_s5 = sshll.u32 %s1547_s3, 4  ;;  %s20_s26 = int_to_ptr.vmem [resolvable:$true] %s19_s26  ;;  %s57_s5 = int_to_ptr.hbm [resolvable:$true] %s56_s5 }
   0x9   :  { %25 = dma.hbm_to_vmem [thread:$0]  %s18_s22, 128, %s20_s26, [#allocation3], %s1446_s23, %s1446_s23, %s1447_s24  }
   0xa   :  { %s1449_s6 = smov [#allocation7]   ;;  %s1450_s0 = smov [#allocation8]  }
   0xb   :  { %s45_s7 = sshll.u32 %s1449_s6, 4  ;;  %s58_s8 = sshll.u32 %s1450_s0, 4  ;;  %s46_s7 = int_to_ptr.vmem [resolvable:$true] %s45_s7  ;;  %s59_s8 = int_to_ptr.vmem [resolvable:$true] %s58_s8 }
   0xc   :  { %51 = dma.hbm_to_vmem [thread:$0]  %s44_s29, 3072, %s46_s7, [#allocation6], %s1446_s23, %s1446_s23, %s1447_s24  }
   0xd   :  { %s1451_s9 = smov 192   ;;  %s1452_s10 = smov 12  }
   0xe   :  { %64 = dma.hbm_to_vmem [thread:$0]  %s57_s5, 3072, %s59_s8, [#allocation9], %s1451_s9, %s1451_s9, %s1452_s10  }
   0xf   :  { %1437 = dma.done.wait [#allocation3], 128  }
  0x10   :  { %1438 = vsyncadd [#allocation3], 4294967168 }
  0x11   :  { %1439 = dma.done.wait [#allocation6], 6144  }
  0x12   :  { %1440 = vsyncadd [#allocation6], 4294961152 }
  0x13   :  { %1441 = dma.done.wait [#allocation9], 3072  }
  0x14   :  { %1442 = vsyncadd [#allocation9], 4294964224  ;;  %v1217_v0 = vld [vmem:[#allocation5 + $0x38] sm:$0xff]  ;;  %v1216_v3 = vld [vmem:[#allocation5 + $0x30] sm:$0xff]  ;;  %s1453_s2 = smov [#allocation10]   ;;  %s896_s13 = sshll.u32 %s1548_s4, 4  ;;  %s897_s13 = int_to_ptr.hbm [resolvable:$true] %s896_s13 }
  0x15   :  { %v1225_v1 = vld [vmem:[#allocation5 + $0x78] sm:$0xff]  ;;  %281 = vmatpush.bf16.xpose.msra.mxu0 %v1217_v0  ;;  %v1224_v4 = vld [vmem:[#allocation5 + $0x70] sm:$0xff]  ;;  %v1215_v6 = vld [vmem:[#allocation5 + $0x28] sm:$0xff]  ;;  %s894_s3 = sshll.u32 %s1453_s2, 4  ;;  %s1454_s14 = smov 128   ;;  %s895_s3 = int_to_ptr.vmem [resolvable:$true] %s894_s3 }
  0x16   :  { %v1241_v2 = vld [vmem:[#allocation7 + $0x38] sm:$0xff]  ;;  %295 = vmatpush.bf16.xpose.msra.mxu1 %v1225_v1  ;;  %v1240_v5 = vld [vmem:[#allocation7 + $0x30] sm:$0xff]  ;;  %v1223_v7 = vld [vmem:[#allocation5 + $0x68] sm:$0xff]  ;;  %s1455_s15 = smov 8  }
  0x17   :  { %515 = vmatpush.bf16.xpose.msra.mxu3 %v1241_v2  ;;  %v1239_v8 = vld [vmem:[#allocation7 + $0x28] sm:$0xff]  ;;  %v1214_v9 = vld [vmem:[#allocation5 + $0x20] sm:$0xff]  ;;  %v1213_v12 = vld [vmem:[#allocation5 + $0x18] sm:$0xff] }
  0x18   :  { %v1222_v10 = vld [vmem:[#allocation5 + $0x60] sm:$0xff]  ;;  %v1221_v13 = vld [vmem:[#allocation5 + $0x58] sm:$0xff]  ;;  %v1212_v15 = vld [vmem:[#allocation5 + $0x10] sm:$0xff] }
  0x19   :  { %v1238_v11 = vld [vmem:[#allocation7 + $0x20] sm:$0xff]  ;;  %v1237_v14 = vld [vmem:[#allocation7 + $0x18] sm:$0xff]  ;;  %v1220_v16 = vld [vmem:[#allocation5 + $0x50] sm:$0xff] }
  0x1a   :  { %v1236_v17 = vld [vmem:[#allocation7 + $0x10] sm:$0xff]  ;;  %v1233_v18 = vld [vmem:[#allocation5 + $0xb8] sm:$0xff]  ;;  %v1211_v19 = vld [vmem:[#allocation5 + $0x8] sm:$0xff] }
  0x1b   :  { %v1219_v20 = vld [vmem:[#allocation5 + $0x48] sm:$0xff]  ;;  %309 = vmatpush.bf16.xpose.msra.mxu2 %v1233_v18  ;;  %v1232_v22 = vld [vmem:[#allocation5 + $0xb0] sm:$0xff]  ;;  %v1210_v23 = vld [vmem:[#allocation5] sm:$0xff] }
  0x1c   :  { %v1235_v21 = vld [vmem:[#allocation7 + $0x8] sm:$0xff]  ;;  %v1218_v24 = vld [vmem:[#allocation5 + $0x40] sm:$0xff]  ;;  %v1249_v26 = vld [vmem:[#allocation7 + $0x78] sm:$0xff] }
  0x1d   :  { %282 = vmatpush.bf16.xpose.msra.mxu0 %v1216_v3  ;;  %v1234_v25 = vld [vmem:[#allocation7] sm:$0xff]  ;;  %v1257_v27 = vld [vmem:[#allocation7 + $0xb8] sm:$0xff]  ;;  %v1231_v28 = vld [vmem:[#allocation5 + $0xa8] sm:$0xff] }
  0x1e   :  { %296 = vmatpush.bf16.xpose.msra.mxu1 %v1224_v4  ;;  %v1209_v29 = vld [vmem:[#allocation2] sm:$0xff]  ;;  %v1248_v30 = vld [vmem:[#allocation7 + $0x70] sm:$0xff]  ;;  %v1230_v32 = vld [vmem:[#allocation5 + $0xa0] sm:$0xff] }
  0x1f   :  { %516 = vmatpush.bf16.xpose.msra.mxu3 %v1240_v5  ;;  %v1256_v31 = vld [vmem:[#allocation7 + $0xb0] sm:$0xff]  ;;  %v1247_v33 = vld [vmem:[#allocation7 + $0x68] sm:$0xff]  ;;  %v1229_v35 = vld [vmem:[#allocation5 + $0x98] sm:$0xff] }
  0x20   :  { %v1255_v34 = vld [vmem:[#allocation7 + $0xa8] sm:$0xff]  ;;  %v1246_v36 = vld [vmem:[#allocation7 + $0x60] sm:$0xff]  ;;  %v1245_v38 = vld [vmem:[#allocation7 + $0x58] sm:$0xff] }
  0x21   :  { %v1254_v37 = vld [vmem:[#allocation7 + $0xa0] sm:$0xff]  ;;  %v1253_v39 = vld [vmem:[#allocation7 + $0x98] sm:$0xff]  ;;  %v1228_v40 = vld [vmem:[#allocation5 + $0x90] sm:$0xff] }
  0x22   :  { %v1244_v41 = vld [vmem:[#allocation7 + $0x50] sm:$0xff]  ;;  %v1227_v43 = vld [vmem:[#allocation5 + $0x88] sm:$0xff]  ;;  %v1226_v48 = vld [vmem:[#allocation5 + $0x80] sm:$0xff] }
  0x23   :  { %310 = vmatpush.bf16.xpose.msra.mxu2 %v1232_v22  ;;  %v1252_v42 = vld [vmem:[#allocation7 + $0x90] sm:$0xff]  ;;  %v1199_v44 = vld [vmem:[#allocation8 + $0xa8] sm:$0xf]  ;;  %v1277_v51 = vld [vmem:[#allocation8 + $0x98] sm:$0xf0] }
  0x24   :  { %v1280_v45 = vld [vmem:[#allocation8 + $0xb0] sm:$0xf0]  ;;  %v1243_v46 = vld [vmem:[#allocation7 + $0x48] sm:$0xff]  ;;  %v1187_v50 = vld [vmem:[#allocation8 + $0x90] sm:$0xf] }
  0x25   :  { %283 = vmatpush.bf16.xpose.msra.mxu0 %v1215_v6  ;;  %v1251_v47 = vld [vmem:[#allocation7 + $0x88] sm:$0xff]  ;;  %v1200_v49 = vor.u32 %v1280_v45, %v1199_v44  ;;  %v1242_v52 = vld [vmem:[#allocation7 + $0x40] sm:$0xff]  ;;  %v1188_v54 = vor.u32 %v1277_v51, %v1187_v50  ;;  %v1175_v55 = vld [vmem:[#allocation8 + $0x78] sm:$0xf] }
  0x26   :  { %297 = vmatpush.bf16.xpose.msra.mxu1 %v1223_v7  ;;  %v1250_v53 = vld [vmem:[#allocation7 + $0x80] sm:$0xff]  ;;  %v1271_v59 = vld [vmem:[#allocation8 + $0x68] sm:$0xf0]  ;;  %v1151_v61 = vld [vmem:[#allocation8 + $0x48] sm:$0xf] }
  0x27   :  { %517 = vmatpush.bf16.xpose.msra.mxu3 %v1239_v8  ;;  %v1274_v56 = vld [vmem:[#allocation8 + $0x80] sm:$0xf0]  ;;  %v1163_v58 = vld [vmem:[#allocation8 + $0x60] sm:$0xf]  ;;  %v1268_v62 = vld [vmem:[#allocation8 + $0x50] sm:$0xf0] }
  0x28   :  { %v1176_v57 = vor.u32 %v1274_v56, %v1175_v55  ;;  %v1164_v60 = vor.u32 %v1271_v59, %v1163_v58  ;;  %v1152_v63 = vor.u32 %v1268_v62, %v1151_v61  ;;  %v1139_v0 = vld [vmem:[#allocation8 + $0x30] sm:$0xf]  ;;  %v1265_v1 = vld [vmem:[#allocation8 + $0x38] sm:$0xf0]  ;;  %v1127_v3 = vld [vmem:[#allocation8 + $0x18] sm:$0xf] }
  0x29   :  { %v1140_v2 = vor.u32 %v1265_v1, %v1139_v0  ;;  %v1262_v4 = vld [vmem:[#allocation8 + $0x20] sm:$0xf0]  ;;  %v1279_v6 = vld [vmem:[#allocation8 + $0xac] sm:$0xf]  ;;  %v1201_v7 = vld [vmem:[#allocation8 + $0xb4] sm:$0xf0] }
  0x2a   :  { %v1128_v5 = vor.u32 %v1262_v4, %v1127_v3  ;;  %v1207_v8 = vld [vmem:[#allocation8 + $0xb0] sm:$0xf]  ;;  %v1189_v18 = vld [vmem:[#allocation8 + $0x9c] sm:$0xf0]  ;;  %v1267_v59 = vld [vmem:[#allocation8 + $0x4c] sm:$0xf] }
  0x2b   :  { %311 = vmatpush.bf16.xpose.msra.mxu2 %v1231_v28  ;;  %v1177_v28 = vld [vmem:[#allocation8 + $0x84] sm:$0xf0]  ;;  %v1159_v61 = vld [vmem:[#allocation8 + $0x50] sm:$0xf]  ;;  %v1269_v1 = vld [vmem:[#allocation8 + $0x58] sm:$0xf0] }
  0x2c   :  { %v1160_v3 = vor.u32 %v1269_v1, %v1159_v61 }
  0x2d   :  { %284 = vmatpush.bf16.xpose.msra.mxu0 %v1214_v9  ;;  %v1204_v9 = vor.u32 %v1279_v6, %v1201_v7 }
  0x2e   :  { %298 = vmatpush.bf16.xpose.msra.mxu1 %v1222_v10  ;;  %v1281_v10 = vld [vmem:[#allocation8 + $0xb8] sm:$0xf0] }
  0x2f   :  { %518 = vmatpush.bf16.xpose.msra.mxu3 %v1238_v11  ;;  %v1208_v11 = vor.u32 %v1281_v10, %v1207_v8 }
  0x33   :  { %312 = vmatpush.bf16.xpose.msra.mxu2 %v1230_v32 }
  0x35   :  { %285 = vmatpush.bf16.xpose.msra.mxu0 %v1213_v12 }
  0x36   :  { %299 = vmatpush.bf16.xpose.msra.mxu1 %v1221_v13 }
  0x37   :  { %519 = vmatpush.bf16.xpose.msra.mxu3 %v1237_v14  ;;  %v1115_v14 = vld [vmem:[#allocation8] sm:$0xf] }
  0x3b   :  { %313 = vmatpush.bf16.xpose.msra.mxu2 %v1229_v35 }
  0x3d   :  { %286 = vmatpush.bf16.xpose.msra.mxu0 %v1212_v15  ;;  %v1259_v15 = vld [vmem:[#allocation8 + $0x8] sm:$0xf0] }
  0x3e   :  { %300 = vmatpush.bf16.xpose.msra.mxu1 %v1220_v16  ;;  %v1116_v16 = vor.u32 %v1259_v15, %v1115_v14  ;;  %v1147_v14 = vld [vmem:[#allocation8 + $0x38] sm:$0xf] }
  0x3f   :  { %520 = vmatpush.bf16.xpose.msra.mxu3 %v1236_v17  ;;  %v1276_v17 = vld [vmem:[#allocation8 + $0x94] sm:$0xf] }
  0x43   :  { %314 = vmatpush.bf16.xpose.msra.mxu2 %v1228_v40  ;;  %v1171_v40 = vld [vmem:[#allocation8 + $0x68] sm:$0xf] }
  0x45   :  { %287 = vmatpush.bf16.xpose.msra.mxu0 %v1211_v19  ;;  %v1195_v19 = vld [vmem:[#allocation8 + $0x98] sm:$0xf] }
  0x46   :  { %301 = vmatpush.bf16.xpose.msra.mxu1 %v1219_v20  ;;  %v1192_v20 = vor.u32 %v1276_v17, %v1189_v18 }
  0x47   :  { %521 = vmatpush.bf16.xpose.msra.mxu3 %v1235_v21  ;;  %v1278_v21 = vld [vmem:[#allocation8 + $0xa0] sm:$0xf0] }
  0x48   :  { %v1196_v22 = vor.u32 %v1278_v21, %v1195_v19  ;;  %v1135_v21 = vld [vmem:[#allocation8 + $0x20] sm:$0xf] }
  0x4b   :  { %315 = vmatpush.bf16.xpose.msra.mxu2 %v1227_v43 }
  0x4d   :  { %288 = vmatpush.bf16.xpose.msra.mxu0 %v1210_v23 }
  0x4e   :  { %302 = vmatpush.bf16.xpose.msra.mxu1 %v1218_v24 }
  0x4f   :  { %522 = vmatpush.bf16.xpose.msra.mxu3 %v1234_v25 }
  0x53   :  { %316 = vmatpush.bf16.xpose.msra.mxu2 %v1226_v48 }
  0x54   :  { %289 = vmatmul.bf16.vlgmr.msra.gmra.mxu0 %v1209_v29 }
  0x55   :  { %529 = vmatpush.bf16.xpose.msrb.mxu0 %v1249_v26  ;;  %303 = vmatmul.bf16.vlgmr.msra.gmra.mxu1 %v1209_v29 }
  0x56   :  { %543 = vmatpush.bf16.xpose.msrb.mxu1 %v1257_v27  ;;  %523 = vmatmul.bf16.vlgmr.msra.gmra.mxu3 %v1209_v29  ;;  %v1273_v27 = vld [vmem:[#allocation8 + $0x7c] sm:$0xf] }
  0x57   :  { %860 = vmatpush.bf16.xpose.msrb.mxu3 %v1204_v9 }
  0x5a   :  { %317 = vmatmul.bf16.vlgmr.msra.gmra.mxu2 %v1209_v29 }
  0x5b   :  { %846 = vmatpush.bf16.xpose.msrb.mxu2 %v1200_v49 }
  0x5d   :  { %530 = vmatpush.bf16.xpose.msrb.mxu0 %v1248_v30  ;;  %v1275_v30 = vld [vmem:[#allocation8 + $0x88] sm:$0xf0] }
  0x5e   :  { %544 = vmatpush.bf16.xpose.msrb.mxu1 %v1256_v31  ;;  %v1180_v31 = vor.u32 %v1273_v27, %v1177_v28 }
  0x5f   :  { %861 = vmatpush.bf16.xpose.msrb.mxu3 %v1192_v20  ;;  %v1129_v20 = vld [vmem:[#allocation8 + $0x24] sm:$0xf0] }
  0x63   :  { %847 = vmatpush.bf16.xpose.msrb.mxu2 %v1188_v54 }
  0x65   :  { %531 = vmatpush.bf16.xpose.msrb.mxu0 %v1247_v33 }
  0x66   :  { %545 = vmatpush.bf16.xpose.msrb.mxu1 %v1255_v34 }
  0x67   :  { %862 = vmatpush.bf16.xpose.msrb.mxu3 %v1180_v31  ;;  %v1123_v31 = vld [vmem:[#allocation8 + $0x8] sm:$0xf] }
  0x6b   :  { %848 = vmatpush.bf16.xpose.msrb.mxu2 %v1176_v57 }
  0x6d   :  { %532 = vmatpush.bf16.xpose.msrb.mxu0 %v1246_v36 }
  0x6e   :  { %546 = vmatpush.bf16.xpose.msrb.mxu1 %v1254_v37  ;;  %v1270_v37 = vld [vmem:[#allocation8 + $0x64] sm:$0xf] }
  0x73   :  { %849 = vmatpush.bf16.xpose.msrb.mxu2 %v1164_v60  ;;  %v1153_v60 = vld [vmem:[#allocation8 + $0x54] sm:$0xf0] }
  0x74   :  { %v1156_v0 = vor.u32 %v1267_v59, %v1153_v60 }
  0x75   :  { %533 = vmatpush.bf16.xpose.msrb.mxu0 %v1245_v38 }
  0x76   :  { %547 = vmatpush.bf16.xpose.msrb.mxu1 %v1253_v39  ;;  %v1165_v39 = vld [vmem:[#allocation8 + $0x6c] sm:$0xf0] }
  0x7b   :  { %850 = vmatpush.bf16.xpose.msrb.mxu2 %v1152_v63 }
  0x7d   :  { %534 = vmatpush.bf16.xpose.msrb.mxu0 %v1244_v41  ;;  %v1168_v41 = vor.u32 %v1270_v37, %v1165_v39 }
  0x7e   :  { %548 = vmatpush.bf16.xpose.msrb.mxu1 %v1252_v42  ;;  %v1272_v42 = vld [vmem:[#allocation8 + $0x70] sm:$0xf0] }
  0x7f   :  { %v1172_v44 = vor.u32 %v1272_v42, %v1171_v40  ;;  %863 = vmatpush.bf16.xpose.msrb.mxu3 %v1168_v41 }
  0x83   :  { %851 = vmatpush.bf16.xpose.msrb.mxu2 %v1140_v2 }
  0x85   :  { %535 = vmatpush.bf16.xpose.msrb.mxu0 %v1243_v46 }
  0x86   :  { %549 = vmatpush.bf16.xpose.msrb.mxu1 %v1251_v47 }
  0x87   :  { %864 = vmatpush.bf16.xpose.msrb.mxu3 %v1156_v0 }
  0x8b   :  { %852 = vmatpush.bf16.xpose.msrb.mxu2 %v1128_v5 }
  0x8d   :  { %536 = vmatpush.bf16.xpose.msrb.mxu0 %v1242_v52 }
  0x8e   :  { %550 = vmatpush.bf16.xpose.msrb.mxu1 %v1250_v53 }
  0x93   :  { %853 = vmatpush.bf16.xpose.msrb.mxu2 %v1116_v16  ;;  %v1266_v16 = vld [vmem:[#allocation8 + $0x40] sm:$0xf0] }
  0x94   :  { %537 = vmatmul.bf16.vlgmr.msrb.gmra.mxu0 %v1209_v29  ;;  %v1148_v19 = vor.u32 %v1266_v16, %v1147_v14 }
  0x95   :  { %551 = vmatmul.bf16.vlgmr.msrb.gmra.mxu1 %v1209_v29  ;;  %874 = vmatpush.bf16.xpose.msra.mxu0 %v1208_v11  ;;  %v1183_v29 = vld [vmem:[#allocation8 + $0x80] sm:$0xf]  ;;  %v1264_v11 = vld [vmem:[#allocation8 + $0x34] sm:$0xf] }
  0x96   :  { %v1184_v32 = vor.u32 %v1275_v30, %v1183_v29  ;;  %v1258_v29 = vld [vmem:[#allocation8 + $0x4] sm:$0xf]  ;;  %v1117_v30 = vld [vmem:[#allocation8 + $0xc] sm:$0xf0] }
  0x9d   :  { %875 = vmatpush.bf16.xpose.msra.mxu0 %v1196_v22 }
  0xa5   :  { %876 = vmatpush.bf16.xpose.msra.mxu0 %v1184_v32  ;;  %v1120_v32 = vor.u32 %v1258_v29, %v1117_v30 }
  0xad   :  { %877 = vmatpush.bf16.xpose.msra.mxu0 %v1172_v44 }
  0xb5   :  { %878 = vmatpush.bf16.xpose.msra.mxu0 %v1160_v3 }
  0xbd   :  { %879 = vmatpush.bf16.xpose.msra.mxu0 %v1148_v19 }
  0xd1   :  { %v290_v53 = vpop.f32.mrf.mxu0 }
  0xd2   :  { %v1505_v58 = vpop.f32.mrf.mxu1 }
  0xd9   :  { %v1493_v12 = vpop.f32.mrf.mxu3  ;;  %v292_v8 = vpop.f32.mrf.mxu0 }
  0xda   :  { %v1107_v13 = vmul.f32 -1.442695, %v1493_v12  ;;  %v1509_v18 = vpop.f32.mrf.mxu1 }
  0xdc   :  { %1293 = vpow2.f32 %v1107_v13  ;;  %v1141_v13 = vld [vmem:[#allocation8 + $0x3c] sm:$0xf0] }
  0xdd   :  { %v1144_v15 = vor.u32 %v1264_v11, %v1141_v13 }
  0xdf   :  { %865 = vmatpush.bf16.xpose.msrb.mxu3 %v1144_v15 }
  0xe1   :  { %v1496_v23 = vpop.f32.mrf.mxu3 }
  0xe2   :  { %v1294_v24 = vpop.eup %1293  ;;  %v1110_v25 = vmul.f32 -1.442695, %v1496_v23 }
  0xe3   :  { %v575_v26 = vadd.f32 1.0, %v1294_v24 }
  0xe4   :  { %1295 = vpow2.f32 %v1110_v25 }
  0xe5   :  { %1297 = vrcp.f32 %v575_v26  ;;  %vm586_vm0 = vweird.f32 %v575_v26  ;;  %v590_v45 = vand.u32 2147483647, %v575_v26  ;;  %v592_v46 = vand.u32 2147483648, %v575_v26 }
  0xe7   :  { %vm591_vm3 = vcmp.eq.f32.partialorder %v590_v45, 8.507059e+37  ;;  %v593_v51 = vor.u32 1.1754944e-38, %v592_v46 }
  0xea   :  { %v1296_v33 = vpop.eup %1295 }
  0xeb   :  { %v1298_v34 = vpop.eup %1297  ;;  %v578_v35 = vadd.f32 1.0, %v1296_v33  ;;  %v1260_v33 = vld [vmem:[#allocation8 + $0x10] sm:$0xf0] }
  0xec   :  { %v582_v36 = vmul.f32 %v1298_v34, %v575_v26  ;;  %vm587_vm1 = vweird.f32 %v1298_v34 }
  0xed   :  { %1299 = vrcp.f32 %v578_v35  ;;  %vm1499_vm2 = vmor %vm586_vm0, %vm587_vm1  ;;  %vm631_vm4 = vweird.f32 %v578_v35  ;;  %v637_v52 = vand.u32 2147483648, %v578_v35  ;;  %v635_v56 = vand.u32 2147483647, %v578_v35 }
  0xee   :  { %v583_v38 = vsub.f32 1.0, %v582_v36 }
  0xef   :  { %v638_v63 = vor.u32 1.1754944e-38, %v637_v52  ;;  %vm636_vm7 = vcmp.eq.f32.partialorder %v635_v56, 8.507059e+37 }
  0xf0   :  { %v584_v43 = vmul.f32 %v1298_v34, %v583_v38 }
  0xf2   :  { %v585_v47 = vadd.f32 %v1298_v34, %v584_v43 }
  0xf3   :  { %v1300_v48 = vpop.eup %1299 }
  0xf4   :  { %v627_v50 = vmul.f32 %v1300_v48, %v578_v35  ;;  %v589_v54 = vsel %vm1499_vm2, %v1298_v34, %v585_v47  ;;  %vm632_vm5 = vweird.f32 %v1300_v48  ;;  %v1124_v34 = vor.u32 %v1260_v33, %v1123_v31 }
  0xf5   :  { %v594_v62 = vsel %vm591_vm3, %v593_v51, %v589_v54  ;;  %vm633_vm6 = vmor %vm631_vm4, %vm632_vm5 }
  0xf6   :  { %v628_v55 = vsub.f32 1.0, %v627_v50  ;;  %v671_v4 = vmul.f32 %v594_v62, %v1493_v12  ;;  %v1261_v12 = vld [vmem:[#allocation8 + $0x1c] sm:$0xf] }
  0xf7   :  { %v1132_v22 = vor.u32 %v1261_v12, %v1129_v20 }
  0xf8   :  { %v629_v57 = vmul.f32 %v1300_v48, %v628_v55  ;;  %v677_v9 = vmul.f32 %v671_v4, %v290_v53  ;;  %v318_v4 = vpop.f32.mrf.mxu2 }
  0xf9   :  { %866 = vmatpush.bf16.xpose.msrb.mxu3 %v1132_v22 }
  0xfa   :  { %v630_v2 = vadd.f32 %v1300_v48, %v629_v57 }
  0xfc   :  { %v634_v5 = vsel %vm633_vm6, %v1300_v48, %v630_v2 }
  0xfd   :  { %v639_v6 = vsel %vm636_vm7, %v638_v63, %v634_v5 }
  0xfe   :  { %v674_v7 = vmul.f32 %v639_v6, %v1496_v23  ;;  %v1263_v23 = vld [vmem:[#allocation8 + $0x28] sm:$0xf0] }
  0xff   :  { %v1136_v24 = vor.u32 %v1263_v23, %v1135_v21 }
 0x100   :  { %v680_v10 = vmul.f32 %v674_v7, %v292_v8 }
 0x101   :  { %880 = vmatpush.bf16.xpose.msra.mxu0 %v1136_v24  ;;  %867 = vmatpush.bf16.xpose.msrb.mxu3 %v1120_v32 }
 0x102   :  { %v683_v17 = vpack.c.bf16 %v680_v10, %v677_v9 }
 0x104   :  { %854 = vmatmul.bf16.vlgmr.msrb.gmra.mxu2 %v683_v17 }
 0x109   :  { %881 = vmatpush.bf16.xpose.msra.mxu0 %v1124_v34 }
 0x111   :  { %v1511_v25 = vpop.f32.mrf.mxu0 }
 0x112   :  { %v1108_v26 = vmul.f32 -1.442695, %v1511_v25  ;;  %v1514_v27 = vpop.f32.mrf.mxu1 }
 0x113   :  { %v1109_v28 = vmul.f32 -1.442695, %v1514_v27 }
 0x114   :  { %1301 = vpow2.f32 %v1108_v26 }
 0x115   :  { %1303 = vpow2.f32 %v1109_v28 }
 0x119   :  { %v1517_v35 = vpop.f32.mrf.mxu0 }
 0x11a   :  { %v1302_v36 = vpop.eup %1301  ;;  %v1111_v37 = vmul.f32 -1.442695, %v1517_v35  ;;  %v1520_v38 = vpop.f32.mrf.mxu1 }
 0x11b   :  { %v1304_v39 = vpop.eup %1303  ;;  %v576_v40 = vadd.f32 1.0, %v1302_v36  ;;  %v1112_v41 = vmul.f32 -1.442695, %v1520_v38 }
 0x11c   :  { %v577_v42 = vadd.f32 1.0, %v1304_v39  ;;  %1305 = vpow2.f32 %v1111_v37 }
 0x11d   :  { %1307 = vrcp.f32 %v576_v40  ;;  %v607_v57 = vand.u32 2147483648, %v576_v40  ;;  %vm601_vm9 = vweird.f32 %v576_v40  ;;  %v605_v59 = vand.u32 2147483647, %v576_v40 }
 0x11e   :  { %1309 = vrcp.f32 %v577_v42  ;;  %vm616_vm11 = vweird.f32 %v577_v42  ;;  %v620_v63 = vand.u32 2147483647, %v577_v42  ;;  %v622_v2 = vand.u32 2147483648, %v577_v42 }
 0x11f   :  { %1311 = vpow2.f32 %v1112_v41  ;;  %v608_v5 = vor.u32 1.1754944e-38, %v607_v57  ;;  %vm606_vm13 = vcmp.eq.f32.partialorder %v605_v59, 8.507059e+37 }
 0x120   :  { %vm621_vm0 = vcmp.eq.f32.partialorder %v620_v63, 8.507059e+37  ;;  %v623_v15 = vor.u32 1.1754944e-38, %v622_v2 }
 0x122   :  { %v1306_v43 = vpop.eup %1305 }
 0x123   :  { %v1308_v44 = vpop.eup %1307  ;;  %v579_v45 = vadd.f32 1.0, %v1306_v43 }
 0x124   :  { %v1310_v46 = vpop.eup %1309  ;;  %v597_v47 = vmul.f32 %v1308_v44, %v576_v40  ;;  %vm602_vm8 = vweird.f32 %v1308_v44 }
 0x125   :  { %v1312_v48 = vpop.eup %1311  ;;  %v612_v49 = vmul.f32 %v1310_v46, %v577_v42  ;;  %1313 = vrcp.f32 %v579_v45  ;;  %vm1523_vm10 = vmor %vm601_vm9, %vm602_vm8  ;;  %vm617_vm12 = vweird.f32 %v1310_v46  ;;  %v652_v6 = vand.u32 2147483648, %v579_v45 }
 0x126   :  { %v598_v50 = vsub.f32 1.0, %v597_v47  ;;  %v580_v51 = vadd.f32 1.0, %v1312_v48  ;;  %vm1529_vm14 = vmor %vm616_vm11, %vm617_vm12  ;;  %v650_v10 = vand.u32 2147483647, %v579_v45  ;;  %vm646_vm1 = vweird.f32 %v579_v45 }
 0x127   :  { %v613_v52 = vsub.f32 1.0, %v612_v49  ;;  %v653_v19 = vor.u32 1.1754944e-38, %v652_v6 }
 0x128   :  { %v599_v53 = vmul.f32 %v1308_v44, %v598_v50  ;;  %1315 = vrcp.f32 %v580_v51  ;;  %v667_v17 = vand.u32 2147483648, %v580_v51  ;;  %v665_v20 = vand.u32 2147483647, %v580_v51 }
 0x129   :  { %v614_v54 = vmul.f32 %v1310_v46, %v613_v52  ;;  %vm651_vm4 = vcmp.eq.f32.partialorder %v650_v10, 8.507059e+37  ;;  %vm661_vm5 = vweird.f32 %v580_v51 }
 0x12a   :  { %v600_v55 = vadd.f32 %v1308_v44, %v599_v53  ;;  %v668_v29 = vor.u32 1.1754944e-38, %v667_v17  ;;  %vm666_vm7 = vcmp.eq.f32.partialorder %v665_v20, 8.507059e+37 }
 0x12b   :  { %v1314_v56 = vpop.eup %1313  ;;  %v615_v62 = vadd.f32 %v1310_v46, %v614_v54 }
 0x12c   :  { %v642_v60 = vmul.f32 %v1314_v56, %v579_v45  ;;  %v604_v1 = vsel %vm1523_vm10, %v1308_v44, %v600_v55  ;;  %vm647_vm15 = vweird.f32 %v1314_v56 }
 0x12d   :  { %v609_v11 = vsel %vm606_vm13, %v608_v5, %v604_v1  ;;  %v619_v13 = vsel %vm1529_vm14, %v1310_v46, %v615_v62  ;;  %vm648_vm2 = vmor %vm646_vm1, %vm647_vm15 }
 0x12e   :  { %v1316_v0 = vpop.eup %1315  ;;  %v643_v3 = vsub.f32 1.0, %v642_v60  ;;  %v672_v21 = vmul.f32 %v609_v11, %v1511_v25  ;;  %v624_v22 = vsel %vm621_vm0, %v623_v15, %v619_v13  ;;  %v320_v25 = vpop.f32.mrf.mxu2 }
 0x12f   :  { %v657_v7 = vmul.f32 %v1316_v0, %v580_v51  ;;  %vm662_vm3 = vweird.f32 %v1316_v0  ;;  %v673_v30 = vmul.f32 %v624_v22, %v1514_v27 }
 0x130   :  { %v644_v9 = vmul.f32 %v1314_v56, %v643_v3  ;;  %vm663_vm6 = vmor %vm661_vm5, %vm662_vm3  ;;  %v678_v32 = vmul.f32 %v672_v21, %v1505_v58 }
 0x131   :  { %v658_v14 = vsub.f32 1.0, %v657_v7  ;;  %v679_v39 = vmul.f32 %v673_v30, %v318_v4 }
 0x132   :  { %v645_v16 = vadd.f32 %v1314_v56, %v644_v9 }
 0x133   :  { %v659_v12 = vmul.f32 %v1316_v0, %v658_v14 }
 0x134   :  { %v649_v23 = vsel %vm648_vm2, %v1314_v56, %v645_v16 }
 0x135   :  { %v654_v24 = vsel %vm651_vm4, %v653_v19, %v649_v23  ;;  %v660_v26 = vadd.f32 %v1316_v0, %v659_v12 }
 0x136   :  { %v675_v28 = vmul.f32 %v654_v24, %v1517_v35 }
 0x137   :  { %v664_v31 = vsel %vm663_vm6, %v1316_v0, %v660_v26 }
 0x138   :  { %v681_v33 = vmul.f32 %v675_v28, %v1509_v18  ;;  %v669_v34 = vsel %vm666_vm7, %v668_v29, %v664_v31 }
 0x139   :  { %v676_v36 = vmul.f32 %v669_v34, %v1520_v38 }
 0x13a   :  { %v684_v37 = vpack.c.bf16 %v681_v33, %v678_v32 }
 0x13b   :  { %v682_v40 = vmul.f32 %v676_v36, %v320_v25 }
 0x13c   :  { %868 = vmatmul.bf16.vlgmr.msrb.gmra.mxu3 %v684_v37 }
 0x13d   :  { %v685_v41 = vpack.c.bf16 %v682_v40, %v679_v39 }
 0x13f   :  { %882 = vmatmul.bf16.vlgmr.msra.gmra.mxu0 %v685_v41 }
 0x187   :  { %v855_v35 = vpop.f32.mrf.mxu2 }
 0x18f   :  { %v857_v58 = vpop.f32.mrf.mxu2 }
 0x1bc   :  { %v883_v42 = vpop.f32.mrf.mxu0 }
 0x1bf   :  { %v869_v43 = vpop.f32.mrf.mxu3 }
 0x1c0   :  { %v870_v27 = vadd.f32 %v869_v43, %v855_v35 }
 0x1c2   :  { %v884_v44 = vadd.f32 %v883_v42, %v870_v27 }
 0x1c4   :  { %888 = vst [vmem:[#allocation10] sm:$0xff] %v884_v44  ;;  %v885_v45 = vpop.f32.mrf.mxu0 }
 0x1c7   :  { %v871_v18 = vpop.f32.mrf.mxu3 }
 0x1c8   :  { %v872_v38 = vadd.f32 %v871_v18, %v857_v58 }
 0x1ca   :  { %v886_v46 = vadd.f32 %v885_v45, %v872_v38 }
 0x1cc   :  { %889 = vst [vmem:[#allocation10 + $0x8] sm:$0xff] %v886_v46 }
 0x1cd   :  { %902 = dma.vmem_to_hbm [thread:$0]  %s895_s3, 256, %s897_s13, [#allocation4], %s1454_s14, %s1454_s14, %s1455_s15  }
 0x1ce   :  { %1443 = dma.done.wait [#allocation4], 256  }
 0x1cf   :  { %1444 = vsyncadd [#allocation4], 4294967040 }
 0x1d0   :  { %907 = vsyncpa [#allocation3], 1 }
 0x1d1   :  { %908 = vsyncpa [#allocation6], 1 }
 0x1d2   :  { %909 = vsyncpa [#allocation9], 1 }
 0x1d3   :  { %910 = vsyncpa [#allocation4], 1 }

</bundles_post_ra>
